<compile_context>
chip_gen: v5e
topology: v5e:2x2
jax: 0.10.0
libtpu: 0.0.40
codegen_flags: <defaults>
</compile_context>

<pallas_src>
import functools

import jax
import jax.numpy as jnp
from jax import lax
from jax.experimental import pallas as pl
from jax.experimental.pallas import tpu as pltpu

# ----- module-level constants implied by the PyTorch file -------------------
ACTOR_NUM = 2
STATE_DIM = 8                      # synthetic: len(state_space)
ACTION_DIM = 4                     # synthetic: len(action_space)
X_DIM = STATE_DIM * ACTOR_NUM      # 16   (cat() x part)
U_DIM = ACTION_DIM * ACTOR_NUM     # 8    (cat() u part)
IN_DIM = X_DIM + U_DIM             # 24   (PyTorch l1 fan_in)
H1, H2, H3, OUT = 128, 64, 16, 1

DEFAULT_B_TILE_MAX = 2048          # rows per grid step (fits v5e's 16 MiB scoped VMEM)


def _round_up(n, m):
    return ((n + m - 1) // m) * m


def _cdiv(a, b):
    return -(-a // b)


def _choose_tiling(B, bt_max):
    """Pick (tile_rows, n_tiles) with minimal padding and >=2 tiles for large B."""
    n_tiles = _cdiv(B, bt_max)
    if n_tiles == 1 and B >= 1024:
        n_tiles = 2                       # keep both v7x TensorCores busy
    bt = _round_up(_cdiv(B, n_tiles), 8)  # balanced tile, sublane-aligned
    return bt, n_tiles


def critic_kernel(x_ref, u_ref,
                  w1x_ref, w1u_ref, b1_ref,
                  w2_ref, b2_ref,
                  w3_ref, b3_ref,
                  w4_ref, b4_ref,
                  out_ref):
    """One batch tile of the fused 4-layer MLP. out_ref is a lane-dense (1,1,bt) row."""
    # bf16 casts happen in-kernel (VPU, free slot) -> inputs arrive as f32.
    xb = x_ref[...].astype(jnp.bfloat16)
    ub = u_ref[...].astype(jnp.bfloat16)

    # ---- layer 1: split-K matmul replaces cat([x, u], 1) @ W1 ----
    h = jnp.dot(xb, w1x_ref[...], preferred_element_type=jnp.float32)
    h = h + jnp.dot(ub, w1u_ref[...], preferred_element_type=jnp.float32)
    h = jnp.maximum(h + b1_ref[...], 0.0)                       # f32 bias/ReLU

    # ---- layer 2 ----
    h = jnp.dot(h.astype(jnp.bfloat16), w2_ref[...],
                preferred_element_type=jnp.float32)
    h = jnp.maximum(h + b2_ref[...], 0.0)

    # ---- layer 3 ----
    h = jnp.dot(h.astype(jnp.bfloat16), w3_ref[...],
                preferred_element_type=jnp.float32)
    h = jnp.maximum(h + b3_ref[...], 0.0)                       # (bt, 16) f32

    # ---- layer 4: w4 (1,16) contracted with h (bt,16) on their last dims ----
    # -> (1, bt): batch lands on lanes, so the output block is lane-dense.
    q = lax.dot_general(w4_ref[...], h.astype(jnp.bfloat16),
                        (((1,), (1,)), ((), ())),
                        preferred_element_type=jnp.float32)     # (1, bt)
    q = q + b4_ref[...]                                         # (1,1) broadcast
    out_ref[...] = q[None].astype(out_ref.dtype)                # (1, 1, bt)


@functools.partial(jax.jit, static_argnames=("b_tile",))
def critic_forward(x, u, params, b_tile=DEFAULT_B_TILE_MAX):
    """x: (B, X_DIM) f32, u: (B, U_DIM) f32 -> (B, 1) f32."""
    B = x.shape[0]
    bt, n_tiles = _choose_tiling(B, b_tile)
    b_pad = bt * n_tiles
    if b_pad != B:                            # pad remainder rows in the wrapper
        x = jnp.pad(x, ((0, b_pad - B), (0, 0)))
        u = jnp.pad(u, ((0, b_pad - B), (0, 0)))

    def resident(shape):  # weights/biases: same block every step -> stay in VMEM
        return pl.BlockSpec(shape, lambda i: (0, 0))

    out = pl.pallas_call(
        critic_kernel,
        # Lane-dense output: one (1, bt) row of q values per grid step.
        out_shape=jax.ShapeDtypeStruct((n_tiles, 1, bt), jnp.float32),
        grid=(n_tiles,),
        in_specs=[
            pl.BlockSpec((bt, X_DIM), lambda i: (i, 0)),   # x tile (f32)
            pl.BlockSpec((bt, U_DIM), lambda i: (i, 0)),   # u tile (f32)
            resident((X_DIM, H1)), resident((U_DIM, H1)), resident((1, H1)),
            resident((H1, H2)), resident((1, H2)),
            resident((H2, H3)), resident((1, H3)),
            resident((1, H3)), resident((1, OUT)),
        ],
        out_specs=pl.BlockSpec((1, 1, bt), lambda i: (i, 0, 0)),
        compiler_params=pltpu.CompilerParams(
            dimension_semantics=("parallel",),             # megacore on v7x
            vmem_limit_bytes=32 * 1024 * 1024),
    )(x, u,
      params["w1x"], params["w1u"], params["b1"],
      params["w2"], params["b2"],
      params["w3"], params["b3"],
      params["w4"], params["b4"])

    return out.reshape(b_pad, 1)[:B]


def init_critic_params(key):
    """nn.Linear-style init (uniform +/- 1/sqrt(fan_in)).

    Weights stored (in, out) so the kernel computes h @ W + b (== x @ W.T + b in
    PyTorch). w1 is split into x/u halves; matmul weights are bf16, biases f32,
    and w4 is a bf16 (1, 16) row used in the trans-B layer-4 dot.
    """
    def linear(k, fan_in, fan_out):
        kw, kb = jax.random.split(k)
        bound = 1.0 / (fan_in ** 0.5)
        w = jax.random.uniform(kw, (fan_in, fan_out), jnp.float32, -bound, bound)
        b = jax.random.uniform(kb, (1, fan_out), jnp.float32, -bound, bound)
        return w, b

    k1, k2, k3, k4 = jax.random.split(key, 4)
    w1, b1 = linear(k1, IN_DIM, H1)          # fan_in = 24, matching PyTorch l1
    w2, b2 = linear(k2, H1, H2)
    w3, b3 = linear(k3, H2, H3)
    w4, b4 = linear(k4, H3, OUT)
    return {
        "w1x": w1[:X_DIM].astype(jnp.bfloat16),   # (16, 128)
        "w1u": w1[X_DIM:].astype(jnp.bfloat16),   # (8, 128)
        "b1": b1,
        "w2": w2.astype(jnp.bfloat16), "b2": b2,
        "w3": w3.astype(jnp.bfloat16), "b3": b3,
        "w4": w4.T.astype(jnp.bfloat16),          # (1, 16) bf16 row vector
        "b4": b4,                                  # (1, 1) f32
    }


def critic_reference(x, u, params):
    """Pure-JAX reference with the same (bf16-matmul, f32-accumulate) numerics."""
    # NOTE: bf16 weights/activations deviate slightly from the f32 torch module;
    # the reference mirrors the kernel's numerics so the check is meaningful.
    xb = x.astype(jnp.bfloat16)
    ub = u.astype(jnp.bfloat16)
    h = (jnp.dot(xb, params["w1x"], preferred_element_type=jnp.float32)
         + jnp.dot(ub, params["w1u"], preferred_element_type=jnp.float32))
    h = jnp.maximum(h + params["b1"], 0.0)
    h = jnp.dot(h.astype(jnp.bfloat16), params["w2"],
                preferred_element_type=jnp.float32)
    h = jnp.maximum(h + params["b2"], 0.0)
    h = jnp.dot(h.astype(jnp.bfloat16), params["w3"],
                preferred_element_type=jnp.float32)
    h = jnp.maximum(h + params["b3"], 0.0)
    q = jnp.dot(h.astype(jnp.bfloat16), params["w4"].T,
                preferred_element_type=jnp.float32)
    return q + params["b4"]


if __name__ == "__main__":
    key = jax.random.PRNGKey(0)
    kp, kx, ku, kx2, ku2 = jax.random.split(key, 5)

    params = init_critic_params(kp)

    # --- small test (batch=2), single grid step ---
    B = 2
    x = jax.random.normal(kx, (B, X_DIM), jnp.float32)   # (2, 16)
    u = jax.random.normal(ku, (B, U_DIM), jnp.float32)   # (2, 8)
    out = jax.block_until_ready(critic_forward(x, u, params))
    ref = critic_reference(x, u, params)
    assert out.shape == (B, OUT), out.shape
    assert jnp.allclose(out, ref, atol=1e-3, rtol=1e-3), (out, ref)

    # --- ragged-batch test exercising multiple grid steps + remainder padding ---
    B2 = 300
    x2 = jax.random.normal(kx2, (B2, X_DIM), jnp.float32)
    u2 = jax.random.normal(ku2, (B2, U_DIM), jnp.float32)
    out2 = jax.block_until_ready(critic_forward(x2, u2, params, b_tile=128))
    ref2 = critic_reference(x2, u2, params)
    assert out2.shape == (B2, OUT), out2.shape
    assert jnp.allclose(out2, ref2, atol=1e-3, rtol=1e-3)

    print("KERNEL_OK")
</pallas_src>

<mosaic_0001>
module attributes {stable_mosaic.version = 11 : i64} {
  func.func @critic_kernel(%arg0: i32, %arg1: memref<8x16xf32, #tpu.memory_space<vmem>>, %arg2: memref<8x8xf32, #tpu.memory_space<vmem>>, %arg3: memref<16x128xbf16, #tpu.memory_space<vmem>>, %arg4: memref<8x128xbf16, #tpu.memory_space<vmem>>, %arg5: memref<1x128xf32, #tpu.memory_space<vmem>>, %arg6: memref<128x64xbf16, #tpu.memory_space<vmem>>, %arg7: memref<1x64xf32, #tpu.memory_space<vmem>>, %arg8: memref<64x16xbf16, #tpu.memory_space<vmem>>, %arg9: memref<1x16xf32, #tpu.memory_space<vmem>>, %arg10: memref<1x16xbf16, #tpu.memory_space<vmem>>, %arg11: memref<1x1xf32, #tpu.memory_space<vmem>>, %arg12: memref<1x1x8xf32, #tpu.memory_space<vmem>>) attributes {dimension_semantics = [#tpu.dimension_semantics<parallel>], iteration_bounds = array<i64: 1>, scalar_prefetch = 0 : i64, scratch_operands = 0 : i64, tpu.core_type = #tpu.core_type<tc>, window_params = [{transform_indices = @transform_0, window_bounds = array<i64: 8, 16>}, {transform_indices = @transform_1, window_bounds = array<i64: 8, 8>}, {pipeline_mode = #tpu.pipeline_mode<synchronous>, transform_indices = @transform_2, window_bounds = array<i64: 16, 128>}, {pipeline_mode = #tpu.pipeline_mode<synchronous>, transform_indices = @transform_3, window_bounds = array<i64: 8, 128>}, {pipeline_mode = #tpu.pipeline_mode<synchronous>, transform_indices = @transform_4, window_bounds = array<i64: 1, 128>}, {pipeline_mode = #tpu.pipeline_mode<synchronous>, transform_indices = @transform_5, window_bounds = array<i64: 128, 64>}, {pipeline_mode = #tpu.pipeline_mode<synchronous>, transform_indices = @transform_6, window_bounds = array<i64: 1, 64>}, {pipeline_mode = #tpu.pipeline_mode<synchronous>, transform_indices = @transform_7, window_bounds = array<i64: 64, 16>}, {pipeline_mode = #tpu.pipeline_mode<synchronous>, transform_indices = @transform_8, window_bounds = array<i64: 1, 16>}, {pipeline_mode = #tpu.pipeline_mode<synchronous>, transform_indices = @transform_9, window_bounds = array<i64: 1, 16>}, {pipeline_mode = #tpu.pipeline_mode<synchronous>, transform_indices = @transform_10, window_bounds = array<i64: 1, 1>}, {transform_indices = @transform_11, window_bounds = array<i64: 1, 1, 8>}]} {
    %c0 = arith.constant 0 : index
    %c0_0 = arith.constant 0 : index
    %0 = vector.load %arg1[%c0, %c0_0] : memref<8x16xf32, #tpu.memory_space<vmem>>, vector<8x16xf32>
    %1 = arith.truncf %0 : vector<8x16xf32> to vector<8x16xbf16>
    %c0_1 = arith.constant 0 : index
    %c0_2 = arith.constant 0 : index
    %2 = vector.load %arg2[%c0_1, %c0_2] : memref<8x8xf32, #tpu.memory_space<vmem>>, vector<8x8xf32>
    %3 = arith.truncf %2 : vector<8x8xf32> to vector<8x8xbf16>
    %c0_3 = arith.constant 0 : index
    %c0_4 = arith.constant 0 : index
    %4 = vector.load %arg3[%c0_3, %c0_4] : memref<16x128xbf16, #tpu.memory_space<vmem>>, vector<16x128xbf16>
    %cst = arith.constant dense<0.000000e+00> : vector<8x128xf32>
    %5 = tpu.matmul %1, %4, %cst {dimension_numbers = #tpu.dot_dimension_numbers<[1], [0], [0], [1], [0, 0, 1, 1], [], []>} : vector<8x16xbf16>, vector<16x128xbf16>, vector<8x128xf32> -> vector<8x128xf32>
    %c0_5 = arith.constant 0 : index
    %c0_6 = arith.constant 0 : index
    %6 = vector.load %arg4[%c0_5, %c0_6] : memref<8x128xbf16, #tpu.memory_space<vmem>>, vector<8x128xbf16>
    %cst_7 = arith.constant dense<0.000000e+00> : vector<8x128xf32>
    %7 = tpu.matmul %3, %6, %cst_7 {dimension_numbers = #tpu.dot_dimension_numbers<[1], [0], [0], [1], [0, 0, 1, 1], [], []>} : vector<8x8xbf16>, vector<8x128xbf16>, vector<8x128xf32> -> vector<8x128xf32>
    %8 = arith.addf %5, %7 : vector<8x128xf32>
    %c0_8 = arith.constant 0 : index
    %c0_9 = arith.constant 0 : index
    %9 = vector.load %arg5[%c0_8, %c0_9] : memref<1x128xf32, #tpu.memory_space<vmem>>, vector<1x128xf32>
    %10 = vector.broadcast %9 : vector<1x128xf32> to vector<8x128xf32>
    %11 = arith.addf %8, %10 : vector<8x128xf32>
    %cst_10 = arith.constant 0.000000e+00 : f32
    %12 = vector.broadcast %cst_10 : f32 to vector<8x128xf32>
    %13 = arith.maximumf %11, %12 : vector<8x128xf32>
    %14 = arith.truncf %13 : vector<8x128xf32> to vector<8x128xbf16>
    %c0_11 = arith.constant 0 : index
    %c0_12 = arith.constant 0 : index
    %15 = vector.load %arg6[%c0_11, %c0_12] : memref<128x64xbf16, #tpu.memory_space<vmem>>, vector<128x64xbf16>
    %cst_13 = arith.constant dense<0.000000e+00> : vector<8x64xf32>
    %16 = tpu.matmul %14, %15, %cst_13 {dimension_numbers = #tpu.dot_dimension_numbers<[1], [0], [0], [1], [0, 0, 1, 1], [], []>} : vector<8x128xbf16>, vector<128x64xbf16>, vector<8x64xf32> -> vector<8x64xf32>
    %c0_14 = arith.constant 0 : index
    %c0_15 = arith.constant 0 : index
    %17 = vector.load %arg7[%c0_14, %c0_15] : memref<1x64xf32, #tpu.memory_space<vmem>>, vector<1x64xf32>
    %18 = vector.broadcast %17 : vector<1x64xf32> to vector<8x64xf32>
    %19 = arith.addf %16, %18 : vector<8x64xf32>
    %cst_16 = arith.constant 0.000000e+00 : f32
    %20 = vector.broadcast %cst_16 : f32 to vector<8x64xf32>
    %21 = arith.maximumf %19, %20 : vector<8x64xf32>
    %22 = arith.truncf %21 : vector<8x64xf32> to vector<8x64xbf16>
    %c0_17 = arith.constant 0 : index
    %c0_18 = arith.constant 0 : index
    %23 = vector.load %arg8[%c0_17, %c0_18] : memref<64x16xbf16, #tpu.memory_space<vmem>>, vector<64x16xbf16>
    %cst_19 = arith.constant dense<0.000000e+00> : vector<8x16xf32>
    %24 = tpu.matmul %22, %23, %cst_19 {dimension_numbers = #tpu.dot_dimension_numbers<[1], [0], [0], [1], [0, 0, 1, 1], [], []>} : vector<8x64xbf16>, vector<64x16xbf16>, vector<8x16xf32> -> vector<8x16xf32>
    %c0_20 = arith.constant 0 : index
    %c0_21 = arith.constant 0 : index
    %25 = vector.load %arg9[%c0_20, %c0_21] : memref<1x16xf32, #tpu.memory_space<vmem>>, vector<1x16xf32>
    %26 = vector.broadcast %25 : vector<1x16xf32> to vector<8x16xf32>
    %27 = arith.addf %24, %26 : vector<8x16xf32>
    %cst_22 = arith.constant 0.000000e+00 : f32
    %28 = vector.broadcast %cst_22 : f32 to vector<8x16xf32>
    %29 = arith.maximumf %27, %28 : vector<8x16xf32>
    %c0_23 = arith.constant 0 : index
    %c0_24 = arith.constant 0 : index
    %30 = vector.load %arg10[%c0_23, %c0_24] : memref<1x16xbf16, #tpu.memory_space<vmem>>, vector<1x16xbf16>
    %31 = arith.truncf %29 : vector<8x16xf32> to vector<8x16xbf16>
    %cst_25 = arith.constant dense<0.000000e+00> : vector<1x8xf32>
    %32 = tpu.matmul %30, %31, %cst_25 {dimension_numbers = #tpu.dot_dimension_numbers<[1], [1], [0], [0], [0, 0, 1, 0], [], []>} : vector<1x16xbf16>, vector<8x16xbf16>, vector<1x8xf32> -> vector<1x8xf32>
    %c0_26 = arith.constant 0 : index
    %c0_27 = arith.constant 0 : index
    %33 = vector.load %arg11[%c0_26, %c0_27] : memref<1x1xf32, #tpu.memory_space<vmem>>, vector<1x1xf32>
    %34 = vector.broadcast %33 : vector<1x1xf32> to vector<1x8xf32>
    %35 = arith.addf %32, %34 : vector<1x8xf32>
    %36 = vector.shape_cast %35 : vector<1x8xf32> to vector<1x1x8xf32>
    %c0_28 = arith.constant 0 : index
    %c0_29 = arith.constant 0 : index
    %c0_30 = arith.constant 0 : index
    %37 = vector.load %arg12[%c0_28, %c0_29, %c0_30] : memref<1x1x8xf32, #tpu.memory_space<vmem>>, vector<1x1x8xf32>
    tpu.vector_store %arg12[%c0_28, %c0_29, %c0_30], %36 {strides = array<i32>} : memref<1x1x8xf32, #tpu.memory_space<vmem>>, vector<1x1x8xf32>,
    return
  }
  func.func @transform_0(%arg0: i32) -> (i32, i32) {
    %c0_i32 = arith.constant 0 : i32
    %c0_i32_0 = arith.constant 0 : i32
    return %arg0, %c0_i32 : i32, i32
  }
  func.func @transform_1(%arg0: i32) -> (i32, i32) {
    %c0_i32 = arith.constant 0 : i32
    %c0_i32_0 = arith.constant 0 : i32
    return %arg0, %c0_i32 : i32, i32
  }
  func.func @transform_2(%arg0: i32) -> (i32, i32) {
    %c0_i32 = arith.constant 0 : i32
    %c0_i32_0 = arith.constant 0 : i32
    %c0_i32_1 = arith.constant 0 : i32
    return %c0_i32, %c0_i32_0 : i32, i32
  }
  func.func @transform_3(%arg0: i32) -> (i32, i32) {
    %c0_i32 = arith.constant 0 : i32
    %c0_i32_0 = arith.constant 0 : i32
    %c0_i32_1 = arith.constant 0 : i32
    return %c0_i32, %c0_i32_0 : i32, i32
  }
  func.func @transform_4(%arg0: i32) -> (i32, i32) {
    %c0_i32 = arith.constant 0 : i32
    %c0_i32_0 = arith.constant 0 : i32
    %c0_i32_1 = arith.constant 0 : i32
    return %c0_i32, %c0_i32_0 : i32, i32
  }
  func.func @transform_5(%arg0: i32) -> (i32, i32) {
    %c0_i32 = arith.constant 0 : i32
    %c0_i32_0 = arith.constant 0 : i32
    %c0_i32_1 = arith.constant 0 : i32
    return %c0_i32, %c0_i32_0 : i32, i32
  }
  func.func @transform_6(%arg0: i32) -> (i32, i32) {
    %c0_i32 = arith.constant 0 : i32
    %c0_i32_0 = arith.constant 0 : i32
    %c0_i32_1 = arith.constant 0 : i32
    return %c0_i32, %c0_i32_0 : i32, i32
  }
  func.func @transform_7(%arg0: i32) -> (i32, i32) {
    %c0_i32 = arith.constant 0 : i32
    %c0_i32_0 = arith.constant 0 : i32
    %c0_i32_1 = arith.constant 0 : i32
    return %c0_i32, %c0_i32_0 : i32, i32
  }
  func.func @transform_8(%arg0: i32) -> (i32, i32) {
    %c0_i32 = arith.constant 0 : i32
    %c0_i32_0 = arith.constant 0 : i32
    %c0_i32_1 = arith.constant 0 : i32
    return %c0_i32, %c0_i32_0 : i32, i32
  }
  func.func @transform_9(%arg0: i32) -> (i32, i32) {
    %c0_i32 = arith.constant 0 : i32
    %c0_i32_0 = arith.constant 0 : i32
    %c0_i32_1 = arith.constant 0 : i32
    return %c0_i32, %c0_i32_0 : i32, i32
  }
  func.func @transform_10(%arg0: i32) -> (i32, i32) {
    %c0_i32 = arith.constant 0 : i32
    %c0_i32_0 = arith.constant 0 : i32
    %c0_i32_1 = arith.constant 0 : i32
    return %c0_i32, %c0_i32_0 : i32, i32
  }
  func.func @transform_11(%arg0: i32) -> (i32, i32, i32) {
    %c0_i32 = arith.constant 0 : i32
    %c0_i32_0 = arith.constant 0 : i32
    %c0_i32_1 = arith.constant 0 : i32
    return %arg0, %c0_i32, %c0_i32_0 : i32, i32, i32
  }
}

</mosaic_0001>

<bundles_post_ra>
// kernel: critic_forward.1
= control target key start
LH: loop header
LB: loop body
LE: loop exit
PB: predicated region body
PF: predicated region fallthrough
CT: control target
= control target key end

     0   :  { %vm52_vm0 = vcmask 1043456   ;;  %vm48_vm1 = vcmask 64512   ;;  %vm75_vm2 = vcmask 130048   ;;  %vm218_vm3 = vcmask 523264   ;;  %s474_s3 = inlined_call_operand.vmem [shape: bf16[8,128], index: 3, kind: input, shape index: {}]   ;;  %s475_s2 = inlined_call_operand.vmem [shape: bf16[16,128], index: 2, kind: input, shape index: {}]   ;;  %s476_s1 = inlined_call_operand.vmem [shape: f32[8,8], index: 1, kind: input, shape index: {}]   ;;  %s477_s0 = inlined_call_operand.vmem [shape: f32[8,16], index: 0, kind: input, shape index: {}]   ;;  %s478_s5 = inlined_call_operand.vmem [shape: bf16[128,64], index: 5, kind: input, shape index: {}]   ;;  %s479_s4 = inlined_call_operand.vmem [shape: f32[1,128], index: 4, kind: input, shape index: {}]   ;;  %s480_s6 = inlined_call_operand.vmem [shape: f32[1,64], index: 6, kind: input, shape index: {}]   ;;  %s481_s7 = inlined_call_operand.vmem [shape: bf16[64,16], index: 7, kind: input, shape index: {}]   ;;  %s482_s8 = inlined_call_operand.vmem [shape: f32[1,16], index: 8, kind: input, shape index: {}]   ;;  %s483_s10 = inlined_call_operand.<no memory space> [shape: f32[1,1], index: 10, kind: input, shape index: {}]   ;;  %s484_s9 = inlined_call_operand.vmem [shape: bf16[1,16], index: 9, kind: input, shape index: {}]   ;;  %s485_s11 = inlined_call_operand.vmem [shape: f32[1,1,8], index: 11, kind: output, shape index: {}]  }
   0x1   :  { %v47_v0 = vld [vmem:[%s474_s3] sm:$0xf]  ;;  %v334_v6 = vld [vmem:[%s478_s5 + $0x38] sm:$0xff]  ;;  %v333_v8 = vld [vmem:[%s478_s5 + $0x30] sm:$0xff]  ;;  %v16_v34 = vstv %s483_s10  ;;  %v344_v35 = vmov 0   ;;  %vm264_vm4 = vcmask 57344  }
   0x2   :  { %v326_v1 = vld [vmem:[%s475_s2] sm:$0xff]  ;;  %v54_v3 = vsel %vm52_vm0, %v47_v0, 0  ;;  %167 = vmatpush.bf16.msra.mxu2 %v334_v6  ;;  %v332_v9 = vld [vmem:[%s478_s5 + $0x28] sm:$0xff]  ;;  %v330_v11 = vld [vmem:[%s478_s5 + $0x18] sm:$0xff]  ;;  %340 = vset.pattern.permute.xlu0 %v344_v35  ;;  %17 = vst [vmem:[#allocation2] sm:$0x1] %v16_v34 }
   0x3   :  { %v43_v2 = vld [vmem:[%s476_s1] sm:$0xff]  ;;  %63 = vmatpush.bf16.msra.mxu0 %v54_v3  ;;  %86 = vmatpush.bf16.msra.mxu1 %v326_v1  ;;  %v329_v12 = vld [vmem:[%s478_s5 + $0x10] sm:$0xff]  ;;  %v328_v13 = vld [vmem:[%s478_s5 + $0x8] sm:$0xff] }
   0x4   :  { %v44_v4 = vpack.c.bf16 %v43_v2, %v43_v2  ;;  %v41_v5 = vld [vmem:[%s477_s0] sm:$0xff]  ;;  %v338_v15 = vld [vmem:[%s481_s7 + $0x18] sm:$0xff]  ;;  %v337_v16 = vld [vmem:[%s481_s7 + $0x10] sm:$0xff] }
   0x5   :  { %v42_v7 = vpack.c.bf16 %v41_v5, %v41_v5  ;;  %v331_v10 = vld [vmem:[%s478_s5 + $0x20] sm:$0xff]  ;;  %226 = vmatpush.bf16.msra.mxu3 %v338_v15  ;;  %v336_v26 = vld [vmem:[%s481_s7 + $0x8] sm:$0xff] }
   0x6   :  { %270 = vmatmul.msk.bf16.vlgmr.msra.gmra.mxu0 %vm48_vm1, %v44_v4  ;;  %168 = vmatpush.bf16.msra.mxu2 %v333_v8  ;;  %v327_v14 = vld [vmem:[%s478_s5] sm:$0xff] }
   0x7   :  { %275 = vmatmul.msk.bf16.vlgmr.msra.gmra.mxu1 %vm75_vm2, %v42_v7  ;;  %v341_v17 = vld [vmem:[%s479_s4] ss:$0 sm:$0xff] }
   0x8   :  { %v335_v27 = vld [vmem:[%s481_s7] sm:$0xff] }
   0x9   :  { %227 = vmatpush.bf16.msra.mxu3 %v337_v16  ;;  %v342_v28 = vld [vmem:[%s480_s6] ss:$0 sm:$0xff] }
   0xa   :  { %169 = vmatpush.bf16.msra.mxu2 %v332_v9  ;;  %v238_v36 = vld [vmem:[#allocation2] sm:$0x1] }
   0xb   :  { %241 = vperm.xlu0 %340, %v238_v36   ;;  %v343_v37 = vld [vmem:[%s482_s8] ss:$0 sm:$0xff] }
   0xc   :  { %v236_v44 = vld [vmem:[%s484_s9] sm:$0x1] }
   0xd   :  { %228 = vmatpush.bf16.msra.mxu3 %v336_v26 }
   0xe   :  { %170 = vmatpush.bf16.msra.mxu2 %v331_v10 }
  0x11   :  { %229 = vmatpush.bf16.msra.mxu3 %v335_v27 }
  0x12   :  { %171 = vmatpush.bf16.msra.mxu2 %v330_v11 }
  0x16   :  { %172 = vmatpush.bf16.msra.mxu2 %v329_v12 }
  0x1a   :  { %173 = vmatpush.bf16.msra.mxu2 %v328_v13 }
  0x1e   :  { %174 = vmatpush.bf16.msra.mxu2 %v327_v14 }
  0x7d   :  { %v242_v45 = vpop.permute.xlu0 %241 }
  0x7e   :  { %v244_v46 = vperm.slane %v242_v45, 0 }
  0x83   :  { %v65_v18 = vpop.f32.mrf.mxu0 }
  0x84   :  { %v88_v19 = vpop.f32.mrf.mxu1 }
  0x85   :  { %v89_v20 = vadd.f32 %v88_v19, %v65_v18 }
  0x87   :  { %v96_v21 = vadd.f32 %v341_v17, %v89_v20 }
  0x89   :  { %v97_v22 = vmax.f32 %v96_v21, 0.0 }
  0x8b   :  { %v98_v23 = vpack.c.bf16 %v97_v22, %v97_v22  ;;  %v67_v24 = vpop.f32.mrf.mxu0 }
  0x8c   :  { %v90_v25 = vpop.f32.mrf.mxu1 }
  0x8d   :  { %175 = vmatmul.bf16.vlgmr.msra.gmra.mxu2 %v98_v23 }
 0x110   :  { %v176_v29 = vpop.f32.mrf.mxu2 }
 0x111   :  { %v177_v30 = vadd.f32 %v342_v28, %v176_v29 }
 0x113   :  { %v180_v31 = vmax.f32 %v177_v30, 0.0 }
 0x115   :  { %v181_v32 = vpack.c.bf16 %v180_v31, %v180_v31 }
 0x117   :  { %324 = vmatmul.msk.bf16.vlgmr.msra.gmra.mxu3 %vm218_vm3, %v181_v32 }
 0x118   :  { %v178_v33 = vpop.f32.mrf.mxu2 }
 0x19a   :  { %v231_v38 = vpop.f32.mrf.mxu3 }
 0x19b   :  { %v232_v39 = vadd.f32 %v343_v37, %v231_v38 }
 0x19d   :  { %v235_v40 = vmax.f32 %v232_v39, 0.0 }
 0x19f   :  { %v237_v41 = vpack.c.bf16 %v235_v40, %v235_v40 }
 0x1a1   :  { %v249_v42 = vsel %vm75_vm2, %v237_v41, 0 }
 0x1a2   :  { %v233_v43 = vpop.f32.mrf.mxu3  ;;  %258 = vmatpush.bf16.xpose.msrb.mxu0 %v249_v42 }
 0x1a9   :  { %325 = vmatmul.msk.bf16.vlgmr.msrb.gmra.mxu0 %vm75_vm2, %v236_v44 }
 0x226   :  { %v260_v47 = vpop.f32.mrf.mxu0 }
 0x227   :  { %v261_v48 = vadd.f32 %v260_v47, %v244_v46 }
 0x229   :  { %265 = vst.msk [vmem:[%s485_s11] sm:$0x1] %vm264_vm4, %v261_v48 }
 0x22e   :  { %v262_v49 = vpop.f32.mrf.mxu0 }

</bundles_post_ra>
